<compile_context>
chip_gen: v7x
topology: tpu7x:2x2x1
jax: 0.10.0
libtpu: 0.0.40
codegen_flags: <defaults>
</compile_context>

<pallas_src>
import functools
import math

import jax
import jax.numpy as jnp
from jax.experimental import pallas as pl
from jax.experimental.pallas import tpu as pltpu


# ---------------------------------------------------------------------------
# Kernels
# ---------------------------------------------------------------------------

def _softmax_lastdim_kernel(x_ref, o_ref):
    """Block = (block_rows, C); softmax along the last (lane) axis."""
    x = x_ref[...].astype(jnp.float32)
    m = jnp.max(x, axis=-1, keepdims=True)
    e = jnp.exp(x - m)                       # exp evaluated exactly once
    s = jnp.sum(e, axis=-1, keepdims=True)
    # Exact divide: mem-bound kernel, VPU/EUP slots are idle, rows sum to 1.
    o_ref[...] = (e / s).astype(o_ref.dtype)


def _softmax_middim_kernel(x_ref, o_ref):
    """Block = (block_outer, C, block_inner); softmax along the sublane axis.

    Used when the reduction dim is not last (e.g. NCHW, dim=1) so no HBM
    transpose is ever needed.  Padded lanes of a partial edge block only
    affect discarded output lanes.
    """
    x = x_ref[...].astype(jnp.float32)
    m = jnp.max(x, axis=1, keepdims=True)
    e = jnp.exp(x - m)
    s = jnp.sum(e, axis=1, keepdims=True)
    o_ref[...] = (e / s).astype(o_ref.dtype)


# ---------------------------------------------------------------------------
# VMEM budgeting / tiling helpers (generation aware)
# ---------------------------------------------------------------------------

_MIN_GRID_STEPS = 4                 # target grid length for pipelining / 2 TCs
_MIN_STEPS_SLAB_BYTES = 2 << 20     # don't shred tiny tensors into many steps


def _cdiv(a, b):
    return -(-a // b)


@functools.lru_cache(maxsize=None)
def _vmem_limit_bytes():
    """3/4 of physical VMEM: 96 MiB on v5e/v6e (128 MiB), 48 MiB on v7x (64)."""
    try:
        cap = int(pltpu.get_tpu_info().vmem_capacity_bytes)
    except Exception:
        cap = 64 << 20              # unknown generation -> assume smallest (v7x)
    return (cap * 3) // 4


@functools.lru_cache(maxsize=None)
def _block_budget_elems(itemsize):
    """Max elements per block so the per-step VMEM peak stays in budget.

    Peak ~= 2*in_block + 2*out_block (double buffering) + ~3 f32 temporaries
    (the astype(f32) copy, `e`, and the pre-cast result).
    """
    usable = int(_vmem_limit_bytes() * 0.85)      # headroom for misc scratch
    per_elem = 4 * itemsize + 3 * 4
    return max(1, usable // per_elem)


def _apply_min_steps(block, extent, pack, other_steps, slab_bytes):
    """Shrink `block` so the total grid has >= _MIN_GRID_STEPS steps on large
    slabs (DMA/compute overlap; v7x 2-TC sharding).  No-op on small tensors."""
    if slab_bytes < _MIN_STEPS_SLAB_BYTES:
        return block
    steps = other_steps * _cdiv(extent, max(1, block))
    if steps >= _MIN_GRID_STEPS:
        return block
    want_tiles = _cdiv(_MIN_GRID_STEPS, max(1, other_steps))
    target = _cdiv(extent, want_tiles)
    target = max(pack, _cdiv(target, pack) * pack)      # round up to pack
    return min(block, target)


def _cost_estimate(n_elems, itemsize):
    return pl.CostEstimate(
        flops=5 * n_elems,
        transcendentals=n_elems,
        bytes_accessed=2 * n_elems * itemsize,
    )


# ---------------------------------------------------------------------------
# pallas_call launchers
# ---------------------------------------------------------------------------

@functools.partial(jax.jit, static_argnums=(1,))
def _softmax_lastdim(slab, block_rows):
    rows, C = slab.shape
    spec = pl.BlockSpec((block_rows, C), lambda i: (i, 0))
    return pl.pallas_call(
        _softmax_lastdim_kernel,
        out_shape=jax.ShapeDtypeStruct(slab.shape, slab.dtype),
        grid=(pl.cdiv(rows, block_rows),),
        in_specs=[spec],
        out_specs=spec,
        compiler_params=pltpu.CompilerParams(
            dimension_semantics=("parallel",),
            vmem_limit_bytes=_vmem_limit_bytes(),
        ),
        cost_estimate=_cost_estimate(slab.size, slab.dtype.itemsize),
    )(slab)


@functools.partial(jax.jit, static_argnums=(1, 2))
def _softmax_middim(slab, block_outer, block_inner):
    outer, C, inner = slab.shape
    spec = pl.BlockSpec((block_outer, C, block_inner), lambda i, j: (i, 0, j))
    return pl.pallas_call(
        _softmax_middim_kernel,
        out_shape=jax.ShapeDtypeStruct(slab.shape, slab.dtype),
        grid=(pl.cdiv(outer, block_outer), pl.cdiv(inner, block_inner)),
        in_specs=[spec],
        out_specs=spec,
        compiler_params=pltpu.CompilerParams(
            dimension_semantics=("parallel", "parallel"),
            vmem_limit_bytes=_vmem_limit_bytes(),
        ),
        cost_estimate=_cost_estimate(slab.size, slab.dtype.itemsize),
    )(slab)


# ---------------------------------------------------------------------------
# Public wrapper (mirrors the PyTorch module's forward)
# ---------------------------------------------------------------------------

def _legacy_softmax_dim(ndim):
    # PyTorch torch.nn.functional._get_softmax_dim
    return 0 if ndim in (0, 1, 3) else 1


def softmax(x, dim=None, invAttnHead=None):
    """Pallas TPU equivalent of `torch.softmax(x, dim)` (forward only)."""
    del invAttnHead  # unused; kept for signature parity with the module
    x = jnp.asarray(x)
    if not jnp.issubdtype(x.dtype, jnp.floating):
        # torch.softmax raises on integer dtypes; we cast instead (permissive).
        x = x.astype(jnp.float32)

    if x.ndim == 0:
        return jnp.ones_like(x)
    if x.size == 0:
        return x

    if dim is None:
        dim = _legacy_softmax_dim(x.ndim)
    if dim < 0:
        dim += x.ndim

    shape = x.shape
    C = shape[dim]
    outer = math.prod(shape[:dim])
    inner = math.prod(shape[dim + 1:])

    itemsize = x.dtype.itemsize
    budget = _block_budget_elems(itemsize)
    slab_bytes = x.size * itemsize

    if inner == 1:
        # Reduction dim is already the minor (lane) axis: 2-D (rows, C) slab.
        # TODO(synk): lane-density dispatch for C < 128 (segmented in-kernel
        # reduction over a 128-wide lane block) to avoid masked vst.msk stores.
        slab = x.reshape(outer, C)
        pack = 16 if itemsize == 2 else 8
        block_rows = min(outer, max(1, budget // C))
        block_rows = _apply_min_steps(block_rows, outer, pack, 1, slab_bytes)
        if block_rows < outer:
            block_rows = max(pack, (block_rows // pack) * pack)
        block_rows = min(block_rows, outer)
        out = _softmax_lastdim(slab, block_rows)
    else:
        # Non-last dim: (outer, C, inner) slab, reduce along the sublane axis.
        # `inner` is tiled as a second parallel grid axis (128-multiple lanes).
        slab = x.reshape(outer, C, inner)
        if inner <= 256:
            block_inner = inner           # full extent is always layout-legal
        else:
            bi_budget = max(128, ((budget // max(1, C)) // 128) * 128)
            block_inner = min((inner // 128) * 128, 512, bi_budget)
        n_inner = _cdiv(inner, block_inner)
        block_outer = min(outer, max(1, budget // max(1, C * block_inner)))
        block_outer = _apply_min_steps(block_outer, outer, 1, n_inner,
                                       slab_bytes)
        block_outer = max(1, min(block_outer, outer))
        # TODO(synk): online-softmax path (grid over C marked "arbitrary",
        # VMEM scratch m/l, pl.when init/finalize) for reduction extents so
        # large that even a (1, C, 128) block exceeds the VMEM budget
        # (hit first on v7x's 64 MiB).
        # TODO(synk): lane-density dispatch when inner < 128 (route through a
        # layout where a >=128 extent sits on lanes).
        out = _softmax_middim(slab, block_outer, block_inner)

    return out.reshape(shape)


class Softmax:
    """Forward-pass mirror of the neural_compressor Softmax helper module."""

    def __init__(self):
        pass

    def __call__(self, x, dim=None, invAttnHead=None):
        return softmax(x, dim=dim, invAttnHead=invAttnHead)


# ---------------------------------------------------------------------------
# Self-test
# ---------------------------------------------------------------------------

if __name__ == "__main__":
    key = jax.random.PRNGKey(0)
    k1, k2, k3, k4, k5 = jax.random.split(key, 5)

    mod = Softmax()

    # NCHW activation; dim=None -> legacy rule picks dim=1 (channel softmax).
    x_nchw = jax.random.normal(k1, (2, 4, 16, 16), dtype=jnp.float32)
    y_nchw = jax.block_until_ready(mod(x_nchw))
    ref_nchw = jax.nn.softmax(x_nchw, axis=1)

    # Attention-style scores; explicit last-dim softmax.
    x_attn = jax.random.normal(k2, (2, 4, 8, 32), dtype=jnp.float32)
    y_attn = jax.block_until_ready(mod(x_attn, dim=-1))
    ref_attn = jax.nn.softmax(x_attn, axis=-1)

    # bf16 input, explicit middle dim (sublane-reduce path, f32 compute).
    x_bf16 = jax.random.normal(k3, (2, 8, 32), dtype=jnp.bfloat16)
    y_bf16 = jax.block_until_ready(mod(x_bf16, dim=1))
    ref_bf16 = jax.nn.softmax(x_bf16.astype(jnp.float32), axis=1)

    # Larger last-dim case that exercises the multi-step row grid.
    x_big = jax.random.normal(k4, (4096, 1024), dtype=jnp.float32)
    y_big = jax.block_until_ready(mod(x_big, dim=-1))
    ref_big = jax.nn.softmax(x_big, axis=-1)

    # Mid-dim case that exercises inner (lane) tiling of the grid.
    x_mid = jax.random.normal(k5, (2, 64, 2048), dtype=jnp.float32)
    y_mid = jax.block_until_ready(mod(x_mid, dim=1))
    ref_mid = jax.nn.softmax(x_mid, axis=1)

    assert jnp.allclose(y_nchw, ref_nchw, atol=1e-5, rtol=1e-5)
    assert jnp.allclose(y_attn, ref_attn, atol=1e-5, rtol=1e-5)
    assert jnp.allclose(y_bf16.astype(jnp.float32), ref_bf16,
                        atol=1e-2, rtol=1e-2)
    assert jnp.allclose(y_big, ref_big, atol=1e-5, rtol=1e-5)
    assert jnp.allclose(y_mid, ref_mid, atol=1e-5, rtol=1e-5)

    print("KERNEL_OK")
</pallas_src>

<mosaic_0001>
module attributes {stable_mosaic.version = 11 : i64} {
  func.func @_softmax_middim_kernel(%arg0: i32, %arg1: i32, %arg2: memref<2x4x256xf32, #tpu.memory_space<vmem>>, %arg3: memref<2x4x256xf32, #tpu.memory_space<vmem>>) attributes {dimension_semantics = [#tpu.dimension_semantics<parallel>, #tpu.dimension_semantics<parallel>], iteration_bounds = array<i64: 1, 1>, scalar_prefetch = 0 : i64, scratch_operands = 0 : i64, tpu.core_type = #tpu.core_type<tc>, window_params = [{transform_indices = @transform_0, window_bounds = array<i64: 2, 4, 256>}, {transform_indices = @transform_1, window_bounds = array<i64: 2, 4, 256>}]} {
    %c0 = arith.constant 0 : index
    %c0_0 = arith.constant 0 : index
    %c0_1 = arith.constant 0 : index
    %0 = vector.load %arg2[%c0, %c0_0, %c0_1] : memref<2x4x256xf32, #tpu.memory_space<vmem>>, vector<2x4x256xf32>
    %cst = arith.constant dense<0xFF800000> : vector<2x256xf32>
    %1 = vector.multi_reduction <maximumf>, %0, %cst [1] : vector<2x4x256xf32> to vector<2x256xf32>
    %2 = vector.shape_cast %1 : vector<2x256xf32> to vector<2x1x256xf32>
    %3 = vector.broadcast %2 : vector<2x1x256xf32> to vector<2x4x256xf32>
    %4 = arith.subf %0, %3 : vector<2x4x256xf32>
    %5 = math.exp %4 : vector<2x4x256xf32>
    %cst_2 = arith.constant dense<0.000000e+00> : vector<2x256xf32>
    %6 = vector.multi_reduction <add>, %5, %cst_2 [1] : vector<2x4x256xf32> to vector<2x256xf32>
    %7 = vector.shape_cast %6 : vector<2x256xf32> to vector<2x1x256xf32>
    %8 = vector.broadcast %7 : vector<2x1x256xf32> to vector<2x4x256xf32>
    %9 = arith.divf %5, %8 : vector<2x4x256xf32>
    %c0_3 = arith.constant 0 : index
    %c0_4 = arith.constant 0 : index
    %c0_5 = arith.constant 0 : index
    %10 = vector.load %arg3[%c0_3, %c0_4, %c0_5] : memref<2x4x256xf32, #tpu.memory_space<vmem>>, vector<2x4x256xf32>
    tpu.vector_store %arg3[%c0_3, %c0_4, %c0_5], %9 {strides = array<i32>} : memref<2x4x256xf32, #tpu.memory_space<vmem>>, vector<2x4x256xf32>,
    return
  }
  func.func @transform_0(%arg0: i32, %arg1: i32) -> (i32, i32, i32) {
    %c0_i32 = arith.constant 0 : i32
    %c0_i32_0 = arith.constant 0 : i32
    return %arg0, %c0_i32, %arg1 : i32, i32, i32
  }
  func.func @transform_1(%arg0: i32, %arg1: i32) -> (i32, i32, i32) {
    %c0_i32 = arith.constant 0 : i32
    %c0_i32_0 = arith.constant 0 : i32
    return %arg0, %c0_i32, %arg1 : i32, i32, i32
  }
}

</mosaic_0001>

<bundles_post_ra>
// kernel: _softmax_middim.1
= control target key start
LH: loop header
LB: loop body
LE: loop exit
PB: predicated region body
PF: predicated region fallthrough
CT: control target
= control target key end

     0   :  { %6 = vsyncpa [#allocation3], 0  ;;  %s253_s0 = inlined_call_operand.hbm [shape: f32[2,4,256], index: 0, kind: input, shape index: {}]   ;;  %s254_s1 = inlined_call_operand.hbm [shape: f32[2,4,256], index: 1, kind: output, shape index: {}]  }
   0x1   :  { %7 = vsyncpa [#allocation4], 0  ;;  %s201_s6 = smov [#allocation2]   ;;  %s153_s10 = scalar_lea.hbm %s253_s0, 256 }
   0x2   :  { %s13_s7 = sshll.u32 %s201_s6, 4  ;;  %p154_p0 = scmp.ne.s32.totalorder %s253_s0, %s153_s10  ;;  %s14_s7 = int_to_ptr.vmem [resolvable:$true] %s13_s7 }
   0x3   :  { %p157_p1 = scmp.lt.u32.totalorder %s153_s10, %s253_s0 }
   0x5   :  { %p159_p2 = pnand %p157_p1, %p154_p0 }
   0x7   :  { %162 = shalt.err (!%p159_p2)
}
   0x8   :  { %s163_s15 = scalar_lea.vmem %s14_s7, 256  ;;  %p168_p4 = scmp.lt.s32.totalorder %s14_s7, %s14_s7 }
   0x9   :  { %p164_p3 = scmp.ne.s32.totalorder %s14_s7, %s163_s15  ;;  %p169_p5 = scmp.lt.s32.totalorder %s163_s15, %s163_s15 }
   0xb   :  { %p170_p6 = por %p169_p5, %p168_p4 }
   0xd   :  { %p171_p7 = pnand %p170_p6, %p164_p3 }
   0xf   :  { %174 = shalt.err (!%p171_p7)
}
  0x10   :  { %s202_s16 = smov 128   ;;  %s203_s17 = smov 8  }
  0x11   :  { %19 = dma.hbm_to_vmem [thread:$0]  %s253_s0, 256, %s14_s7, [#allocation3], %s202_s16, %s202_s16, %s203_s17  }
  0x12   :  { %197 = dma.done.wait [#allocation3], 256  }
  0x13   :  { %198 = vsyncadd [#allocation3], 4294967040  ;;  %vm31_vm0 = vcmask 1043456   ;;  %v23_v0 = vld [vmem:[#allocation2] sm:$0xff]  ;;  %v24_v1 = vld [vmem:[#allocation2 + $0x8] sm:$0xff]  ;;  %s204_s0 = smov [#allocation5]  }
  0x14   :  { %v27_v2 = vcombine.high %v23_v0, %v23_v0  ;;  %v32_v3 = vsel %vm31_vm0, %v23_v0, -inf  ;;  %v28_v4 = vcombine.high %v24_v1, %v24_v1  ;;  %v46_v5 = vsel %vm31_vm0, %v24_v1, -inf  ;;  %s127_s20 = sshll.u32 %s204_s0, 4  ;;  %s128_s20 = int_to_ptr.vmem [resolvable:$true] %s127_s20 }
  0x15   :  { %v33_v6 = vrot.slane %v32_v3, 4  ;;  %v47_v7 = vrot.slane %v46_v5, 4  ;;  %s175_s21 = scalar_lea.vmem %s128_s20, 256  ;;  %p180_p9 = scmp.lt.s32.totalorder %s128_s20, %s128_s20 }
  0x16   :  { %v39_v8 = vsel %vm31_vm0, %v27_v2, -inf  ;;  %v53_v9 = vsel %vm31_vm0, %v28_v4, -inf  ;;  %p176_p8 = scmp.ne.s32.totalorder %s128_s20, %s175_s21  ;;  %p181_p10 = scmp.lt.s32.totalorder %s175_s21, %s175_s21 }
  0x17   :  { %v34_v10 = vmax.f32 %v32_v3, %v33_v6  ;;  %v40_v11 = vrot.slane %v39_v8, 4  ;;  %v48_v12 = vmax.f32 %v46_v5, %v47_v7  ;;  %v54_v13 = vrot.slane %v53_v9, 4 }
  0x18   :  { %p182_p11 = por %p181_p10, %p180_p9 }
  0x19   :  { %v35_v14 = vrot.slane %v34_v10, 2  ;;  %v41_v15 = vmax.f32 %v39_v8, %v40_v11  ;;  %v49_v16 = vrot.slane %v48_v12, 2  ;;  %v55_v17 = vmax.f32 %v53_v9, %v54_v13 }
  0x1a   :  { %p183_p12 = pnand %p182_p11, %p176_p8 }
  0x1b   :  { %v36_v18 = vmax.f32 %v34_v10, %v35_v14  ;;  %v42_v19 = vrot.slane %v41_v15, 2  ;;  %v50_v20 = vmax.f32 %v48_v12, %v49_v16  ;;  %v56_v21 = vrot.slane %v55_v17, 2 }
  0x1d   :  { %v37_v22 = vrot.slane %v36_v18, 1  ;;  %v43_v23 = vmax.f32 %v41_v15, %v42_v19  ;;  %v51_v24 = vrot.slane %v50_v20, 1  ;;  %v57_v25 = vmax.f32 %v55_v17, %v56_v21 }
  0x1f   :  { %v38_v26 = vmax.f32 %v36_v18, %v37_v22  ;;  %v44_v27 = vrot.slane %v43_v23, 1  ;;  %v52_v28 = vmax.f32 %v50_v20, %v51_v24  ;;  %v58_v29 = vrot.slane %v57_v25, 1 }
  0x21   :  { %v45_v30 = vmax.f32 %v43_v23, %v44_v27  ;;  %v59_v31 = vmax.f32 %v57_v25, %v58_v29 }
  0x23   :  { %v64_v32 = vcombine.low %v38_v26, %v45_v30  ;;  %v65_v33 = vcombine.low %v52_v28, %v59_v31 }
  0x25   :  { %v68_v34 = vsub.f32 %v23_v0, %v64_v32  ;;  %v69_v35 = vsub.f32 %v24_v1, %v65_v33 }
  0x27   :  { %v70_v36 = vmul.f32 1.442695, %v68_v34  ;;  %v72_v37 = vmul.f32 1.442695, %v69_v35 }
  0x29   :  { %145 = vpow2.f32 %v70_v36 }
  0x2a   :  { %147 = vpow2.f32 %v72_v37 }
  0x33   :  { %v146_v38 = vpop.eup %145 }
  0x34   :  { %v148_v39 = vpop.eup %147  ;;  %v76_v40 = vcombine.high %v146_v38, %v146_v38  ;;  %v80_v41 = vsel %vm31_vm0, %v146_v38, 0.0 }
  0x35   :  { %v81_v42 = vrot.slane %v80_v41, 4  ;;  %v77_v43 = vcombine.high %v148_v39, %v148_v39  ;;  %v94_v44 = vsel %vm31_vm0, %v148_v39, 0.0 }
  0x36   :  { %v87_v45 = vsel %vm31_vm0, %v76_v40, 0.0  ;;  %v95_v46 = vrot.slane %v94_v44, 4 }
  0x37   :  { %v82_v47 = vadd.f32 %v81_v42, %v80_v41  ;;  %v88_v48 = vrot.slane %v87_v45, 4  ;;  %v101_v49 = vsel %vm31_vm0, %v77_v43, 0.0 }
  0x38   :  { %v96_v50 = vadd.f32 %v95_v46, %v94_v44  ;;  %v102_v51 = vrot.slane %v101_v49, 4 }
  0x39   :  { %v83_v52 = vrot.slane %v82_v47, 2  ;;  %v89_v53 = vadd.f32 %v88_v48, %v87_v45 }
  0x3a   :  { %v97_v54 = vrot.slane %v96_v50, 2  ;;  %v103_v55 = vadd.f32 %v102_v51, %v101_v49 }
  0x3b   :  { %v84_v56 = vadd.f32 %v83_v52, %v82_v47  ;;  %v90_v57 = vrot.slane %v89_v53, 2 }
  0x3c   :  { %v98_v58 = vadd.f32 %v97_v54, %v96_v50  ;;  %v104_v59 = vrot.slane %v103_v55, 2 }
  0x3d   :  { %v85_v60 = vrot.slane %v84_v56, 1  ;;  %v91_v61 = vadd.f32 %v90_v57, %v89_v53 }
  0x3e   :  { %v99_v62 = vrot.slane %v98_v58, 1  ;;  %v105_v63 = vadd.f32 %v104_v59, %v103_v55 }
  0x3f   :  { %v86_v0 = vadd.f32 %v85_v60, %v84_v56  ;;  %v92_v1 = vrot.slane %v91_v61, 1 }
  0x40   :  { %v100_v2 = vadd.f32 %v99_v62, %v98_v58  ;;  %v106_v3 = vrot.slane %v105_v63, 1 }
  0x41   :  { %v93_v4 = vadd.f32 %v92_v1, %v91_v61 }
  0x42   :  { %v107_v5 = vadd.f32 %v106_v3, %v105_v63 }
  0x43   :  { %v112_v6 = vcombine.low %v86_v0, %v93_v4 }
  0x44   :  { %v113_v7 = vcombine.low %v100_v2, %v107_v5 }
  0x45   :  { %149 = vrcp.f32 %v112_v6 }
  0x46   :  { %151 = vrcp.f32 %v113_v7 }
  0x4f   :  { %v150_v8 = vpop.eup %149 }
  0x50   :  { %v152_v9 = vpop.eup %151  ;;  %v117_v10 = vmul.f32 %v150_v8, %v146_v38 }
  0x51   :  { %v119_v11 = vmul.f32 %v152_v9, %v148_v39 }
  0x52   :  { %120 = vst [vmem:[#allocation5] sm:$0xff] %v117_v10 }
  0x53   :  { %121 = vst [vmem:[#allocation5 + $0x8] sm:$0xff] %v119_v11 }
  0x54   :  { %186 = shalt.err (!%p183_p12)
}
  0x55   :  { %s187_s24 = scalar_lea.hbm %s254_s1, 256 }
  0x56   :  { %p188_p13 = scmp.ne.s32.totalorder %s254_s1, %s187_s24  ;;  %p191_p0 = scmp.lt.u32.totalorder %s187_s24, %s254_s1 }
  0x58   :  { %p193_p1 = pnand %p191_p0, %p188_p13 }
  0x5a   :  { %196 = shalt.err (!%p193_p1)
}
  0x5b   :  { %133 = dma.vmem_to_hbm [thread:$0]  %s128_s20, 256, %s254_s1, [#allocation4], %s202_s16, %s202_s16, %s203_s17  }
  0x5c   :  { %199 = dma.done.wait [#allocation4], 256  }
  0x5d   :  { %200 = vsyncadd [#allocation4], 4294967040 }
  0x5e   :  { %137 = vsyncpa [#allocation3], 1 }
  0x5f   :  { %138 = vsyncpa [#allocation4], 1 }

</bundles_post_ra>
